<compile_context>
chip_gen: v7x
topology: tpu7x:2x2x1
jax: 0.10.0
libtpu: 0.0.40
codegen_flags: <defaults>
</compile_context>

<pallas_src>
import functools
import math

import jax
import jax.numpy as jnp
from jax import lax
from jax.experimental import pallas as pl
from jax.experimental.pallas import tpu as pltpu

N_EMBD = 128          # matches module-level n_embd
HEAD_SIZE = 64        # head_size chosen for this synthetic instantiation


def head_kernel(x_ref, wqkv_ref, bqkv_ref, o_ref, *, head_size):
    H = head_size
    T = x_ref.shape[0]

    x = x_ref[...]                                   # (T, C) f32
    w = wqkv_ref[...]                                # (C, 3H) f32

    # Fused QKV projection: one MXU matmul, bf16 operands, f32 accumulation.
    qkv = jnp.dot(x.astype(jnp.bfloat16), w.astype(jnp.bfloat16),
                  preferred_element_type=jnp.float32) + bqkv_ref[...]
    k = qkv[:, 0 * H:1 * H]
    q = qkv[:, 1 * H:2 * H]
    v = qkv[:, 2 * H:3 * H]

    # scores = q @ k^T / sqrt(H) — contract the H axis of both operands so no
    # explicit transpose of k is materialized.  Kept in f32 for logit accuracy
    # (small (T,H)x(H,T) problem; cheap even on the f32 MXU path).
    scores = lax.dot_general(
        q, k, dimension_numbers=(((1,), (1,)), ((), ())),
        preferred_element_type=jnp.float32)
    scores = scores * (1.0 / (H ** 0.5))

    # Per-batch (T, T) causal mask: masked entries get exactly -1e12, matching
    # `scores * tril - 1e12 * (1 - tril)` in the reference.
    row = lax.broadcasted_iota(jnp.int32, (T, T), 0)
    col = lax.broadcasted_iota(jnp.int32, (T, T), 1)
    scores = jnp.where(col <= row, scores, -1000000000000.0)

    # Row-wise softmax, all f32 (exact divide — training-safe).
    m = jnp.max(scores, axis=-1, keepdims=True)
    e = jnp.exp(scores - m)
    attn = e / jnp.sum(e, axis=-1, keepdims=True)

    # attn @ v: bf16 MXU operands, f32 accumulation.
    out = jnp.dot(attn.astype(jnp.bfloat16), v.astype(jnp.bfloat16),
                  preferred_element_type=jnp.float32)
    o_ref[...] = out.astype(o_ref.dtype)


def fuse_head_params(wk, bk, wq, bq, wv, bv):
    """Fuse K/Q/V projections once at parameter-setup time (NOT per call)."""
    wqkv = jnp.concatenate([wk, wq, wv], axis=1)          # (C, 3H)
    bqkv = jnp.concatenate([bk, bq, bv]).reshape(1, -1)   # (1, 3H)
    # TODO(synk): on v5e, consider zero-padding 3H=192 -> 256 so the 128-wide
    # MXU N pushes are full once B*T is large enough to be MXU-bound.
    return wqkv, bqkv


@jax.jit
def head_forward(x, wqkv, bqkv):
    B, T, C = x.shape
    H = wqkv.shape[1] // 3

    return pl.pallas_call(
        functools.partial(head_kernel, head_size=H),
        out_shape=jax.ShapeDtypeStruct((B, T, H), x.dtype),
        grid_spec=pltpu.PrefetchScalarGridSpec(
            num_scalar_prefetch=0,
            grid=(B,),
            in_specs=[
                # x: one batch element per grid step, batch dim squeezed.
                pl.BlockSpec((None, T, C), lambda b: (b, 0, 0)),
                # Fused W_qkv / b_qkv: same block every step -> stays resident.
                pl.BlockSpec((C, 3 * H), lambda b: (0, 0)),
                pl.BlockSpec((1, 3 * H), lambda b: (0, 0)),
            ],
            out_specs=pl.BlockSpec((None, T, H), lambda b: (b, 0, 0)),
        ),
        compiler_params=pltpu.CompilerParams(
            dimension_semantics=("parallel",)),   # batches -> both TCs on v7x
    )(x, wqkv, bqkv)


def reference_forward(x, wk, bk, wq, bq, wv, bv, head_size=HEAD_SIZE):
    k = x @ wk + bk
    q = x @ wq + bq
    v = x @ wv + bv
    scores = jnp.einsum("btd,bsd->bts", q, k) / (head_size ** 0.5)
    T = x.shape[1]
    tril = jnp.tril(jnp.ones((T, T), jnp.float32))
    scores = scores * tril - 1000000000000.0 * (1.0 - tril)
    attn = jax.nn.softmax(scores, axis=-1)
    return jnp.einsum("bts,bsd->btd", attn, v)


if __name__ == "__main__":
    key = jax.random.PRNGKey(0)
    kx, kwk, kbk, kwq, kbq, kwv, kbv = jax.random.split(key, 7)

    B, T, C, H = 2, 8, N_EMBD, HEAD_SIZE
    x = jax.random.normal(kx, (B, T, C), jnp.float32)

    # Deterministic synthetic params (nn.Linear-like uniform init), stored (in, out).
    bound = 1.0 / math.sqrt(C)
    wk = jax.random.uniform(kwk, (C, H), jnp.float32, -bound, bound)
    bk = jax.random.uniform(kbk, (H,), jnp.float32, -bound, bound)
    wq = jax.random.uniform(kwq, (C, H), jnp.float32, -bound, bound)
    bq = jax.random.uniform(kbq, (H,), jnp.float32, -bound, bound)
    wv = jax.random.uniform(kwv, (C, H), jnp.float32, -bound, bound)
    bv = jax.random.uniform(kbv, (H,), jnp.float32, -bound, bound)

    # Fuse once, outside the hot path.
    wqkv, bqkv = fuse_head_params(wk, bk, wq, bq, wv, bv)

    out = head_forward(x, wqkv, bqkv)
    out = jax.block_until_ready(out)

    ref = reference_forward(x, wk, bk, wq, bq, wv, bv)
    assert out.shape == (B, T, H)
    # Tolerance covers bf16 MXU operands (f32 accumulation) vs the f32 reference.
    assert jnp.allclose(out, ref, atol=3e-2, rtol=3e-2), (
        float(jnp.max(jnp.abs(out - ref))))

    print("KERNEL_OK")
</pallas_src>

<mosaic_0001>
module attributes {stable_mosaic.version = 11 : i64} {
  func.func @head_kernel(%arg0: i32, %arg1: memref<1x8x128xf32, #tpu.memory_space<vmem>>, %arg2: memref<128x192xf32, #tpu.memory_space<vmem>>, %arg3: memref<1x192xf32, #tpu.memory_space<vmem>>, %arg4: memref<1x8x64xf32, #tpu.memory_space<vmem>>) attributes {dimension_semantics = [#tpu.dimension_semantics<parallel>], iteration_bounds = array<i64: 2>, scalar_prefetch = 0 : i64, scratch_operands = 0 : i64, tpu.core_type = #tpu.core_type<tc>, window_params = [{transform_indices = @transform_0, window_bounds = array<i64: 1, 8, 128>}, {pipeline_mode = #tpu.pipeline_mode<synchronous>, transform_indices = @transform_1, window_bounds = array<i64: 128, 192>}, {pipeline_mode = #tpu.pipeline_mode<synchronous>, transform_indices = @transform_2, window_bounds = array<i64: 1, 192>}, {transform_indices = @transform_3, window_bounds = array<i64: 1, 8, 64>}]} {
    %c0 = arith.constant 0 : index
    %c0_0 = arith.constant 0 : index
    %c0_1 = arith.constant 0 : index
    %0 = vector.load %arg1[%c0, %c0_0, %c0_1] : memref<1x8x128xf32, #tpu.memory_space<vmem>>, vector<1x8x128xf32>
    %1 = vector.shape_cast %0 : vector<1x8x128xf32> to vector<8x128xf32>
    %c0_2 = arith.constant 0 : index
    %c0_3 = arith.constant 0 : index
    %2 = vector.load %arg2[%c0_2, %c0_3] : memref<128x192xf32, #tpu.memory_space<vmem>>, vector<128x192xf32>
    %3 = arith.truncf %1 : vector<8x128xf32> to vector<8x128xbf16>
    %4 = arith.truncf %2 : vector<128x192xf32> to vector<128x192xbf16>
    %cst = arith.constant dense<0.000000e+00> : vector<8x192xf32>
    %5 = tpu.matmul %3, %4, %cst {dimension_numbers = #tpu.dot_dimension_numbers<[1], [0], [0], [1], [0, 0, 1, 1], [], []>} : vector<8x128xbf16>, vector<128x192xbf16>, vector<8x192xf32> -> vector<8x192xf32>
    %c0_4 = arith.constant 0 : index
    %c0_5 = arith.constant 0 : index
    %6 = vector.load %arg3[%c0_4, %c0_5] : memref<1x192xf32, #tpu.memory_space<vmem>>, vector<1x192xf32>
    %7 = vector.broadcast %6 : vector<1x192xf32> to vector<8x192xf32>
    %8 = arith.addf %5, %7 : vector<8x192xf32>
    %9 = vector.extract_strided_slice %8 {offsets = [0, 0], sizes = [8, 64], strides = [1, 1]} : vector<8x192xf32> to vector<8x64xf32>
    %10 = vector.extract_strided_slice %8 {offsets = [0, 64], sizes = [8, 64], strides = [1, 1]} : vector<8x192xf32> to vector<8x64xf32>
    %11 = vector.extract_strided_slice %8 {offsets = [0, 128], sizes = [8, 64], strides = [1, 1]} : vector<8x192xf32> to vector<8x64xf32>
    %cst_6 = arith.constant dense<0.000000e+00> : vector<8x8xf32>
    %12 = tpu.matmul %10, %9, %cst_6 {dimension_numbers = #tpu.dot_dimension_numbers<[1], [1], [0], [0], [0, 0, 1, 0], [], []>} : vector<8x64xf32>, vector<8x64xf32>, vector<8x8xf32> -> vector<8x8xf32>
    %cst_7 = arith.constant 1.250000e-01 : f32
    %13 = vector.broadcast %cst_7 : f32 to vector<8x8xf32>
    %14 = arith.mulf %12, %13 : vector<8x8xf32>
    %15 = tpu.iota {dimensions = array<i32: 0>} : vector<8x8xi32>
    %16 = tpu.iota {dimensions = array<i32: 1>} : vector<8x8xi32>
    %17 = arith.cmpi sle, %16, %15 : vector<8x8xi32>
    %cst_8 = arith.constant -9.99999995E+11 : f32
    %18 = vector.broadcast %cst_8 : f32 to vector<8x8xf32>
    %19 = arith.select %17, %14, %18 : vector<8x8xi1>, vector<8x8xf32>
    %cst_9 = arith.constant dense<0xFF800000> : vector<8xf32>
    %20 = vector.multi_reduction <maximumf>, %19, %cst_9 [1] : vector<8x8xf32> to vector<8xf32>
    %21 = vector.shape_cast %20 : vector<8xf32> to vector<8x1xf32>
    %22 = vector.broadcast %21 : vector<8x1xf32> to vector<8x8xf32>
    %23 = arith.subf %19, %22 : vector<8x8xf32>
    %24 = math.exp %23 : vector<8x8xf32>
    %cst_10 = arith.constant dense<0.000000e+00> : vector<8xf32>
    %25 = vector.multi_reduction <add>, %24, %cst_10 [1] : vector<8x8xf32> to vector<8xf32>
    %26 = vector.shape_cast %25 : vector<8xf32> to vector<8x1xf32>
    %27 = vector.broadcast %26 : vector<8x1xf32> to vector<8x8xf32>
    %28 = arith.divf %24, %27 : vector<8x8xf32>
    %29 = arith.truncf %28 : vector<8x8xf32> to vector<8x8xbf16>
    %30 = arith.truncf %11 : vector<8x64xf32> to vector<8x64xbf16>
    %cst_11 = arith.constant dense<0.000000e+00> : vector<8x64xf32>
    %31 = tpu.matmul %29, %30, %cst_11 {dimension_numbers = #tpu.dot_dimension_numbers<[1], [0], [0], [1], [0, 0, 1, 1], [], []>} : vector<8x8xbf16>, vector<8x64xbf16>, vector<8x64xf32> -> vector<8x64xf32>
    %c0_12 = arith.constant 0 : index
    %c0_13 = arith.constant 0 : index
    %c0_14 = arith.constant 0 : index
    %32 = vector.load %arg4[%c0_12, %c0_13, %c0_14] : memref<1x8x64xf32, #tpu.memory_space<vmem>>, vector<1x8x64xf32>
    %33 = vector.shape_cast %32 : vector<1x8x64xf32> to vector<8x64xf32>
    %34 = vector.shape_cast %31 : vector<8x64xf32> to vector<1x8x64xf32>
    tpu.vector_store %arg4[%c0_12, %c0_13, %c0_14], %34 {strides = array<i32>} : memref<1x8x64xf32, #tpu.memory_space<vmem>>, vector<1x8x64xf32>,
    return
  }
  func.func @transform_0(%arg0: i32) -> (i32, i32, i32) {
    %c0_i32 = arith.constant 0 : i32
    %c0_i32_0 = arith.constant 0 : i32
    %c0_i32_1 = arith.constant 0 : i32
    return %arg0, %c0_i32, %c0_i32_0 : i32, i32, i32
  }
  func.func @transform_1(%arg0: i32) -> (i32, i32) {
    %c0_i32 = arith.constant 0 : i32
    %c0_i32_0 = arith.constant 0 : i32
    %c0_i32_1 = arith.constant 0 : i32
    return %c0_i32, %c0_i32_0 : i32, i32
  }
  func.func @transform_2(%arg0: i32) -> (i32, i32) {
    %c0_i32 = arith.constant 0 : i32
    %c0_i32_0 = arith.constant 0 : i32
    %c0_i32_1 = arith.constant 0 : i32
    return %c0_i32, %c0_i32_0 : i32, i32
  }
  func.func @transform_3(%arg0: i32) -> (i32, i32, i32) {
    %c0_i32 = arith.constant 0 : i32
    %c0_i32_0 = arith.constant 0 : i32
    %c0_i32_1 = arith.constant 0 : i32
    return %arg0, %c0_i32, %c0_i32_0 : i32, i32, i32
  }
}

</mosaic_0001>

<bundles_post_ra>
// kernel: head_forward.1
= control target key start
LH: loop header
LB: loop body
LE: loop exit
PB: predicated region body
PF: predicated region fallthrough
CT: control target
= control target key end

     0   :  { %8 = vsyncpa [#allocation3], 0  ;;  %s861_s0 = inlined_call_operand.vmem [shape: f32[2,8,128], index: 0, kind: input, shape index: {}]   ;;  %s862_s1 = inlined_call_operand.vmem [shape: f32[128,192], index: 1, kind: input, shape index: {}]   ;;  %s863_s2 = inlined_call_operand.vmem [shape: f32[1,192], index: 2, kind: input, shape index: {}]   ;;  %s864_s3 = inlined_call_operand.hbm [shape: f32[2,8,64], index: 3, kind: output, shape index: {}]  }
   0x1   :  { %10 = vsyncpa [#allocation3 + $0x1], 0  ;;  %s654_s12 = smov 0   ;;  %s656_s13 = smov 0  }
   0x2   :  { %s658_s14 = smov 0   ;;  %s660_s15 = smov 0  }
   0x3 LB: > { %s675_s16 = sadd.s32 4294967295, %s627_s15   ;;  %s490_s17 = sadd.s32 4294967294, %s627_s15   ;;  %s627_s15 = sphi %s660_s15, %s870_s15   ;;  %s623_s14 = sphi %s658_s14, %s869_s14   ;;  %s619_s13 = sphi %s656_s13, %s868_s13   ;;  %s615_s12 = sphi %s654_s12, %s867_s12  }
   0x4   : > { %s679_s18 = sadd.s32 1, %s627_s15   ;;  %s91_s19 = sadd.s32 1, %s623_s14 }
   0x5   : > { %s88_s20 = ssub.s32 %s627_s15, %s679_s18  ;;  %p101_p0 = scmp.ne.s32.totalorder %s623_s14, %s619_s13 }
   0x6   : > { %p89_p1 = scmp.eq.s32.totalorder %s88_s20, 0  ;;  %p102_p2 = scmp.eq.s32.totalorder %s675_s16, 1 }
   0x7   : > { %p107_p3 = scmp.ne.s32.totalorder %s619_s13, %s615_s12  ;;  %p108_p4 = scmp.eq.s32.totalorder %s490_s17, 1 }
   0x8   : > { %s690_s21 = scalar_select %p89_p1, %s623_s14, %s91_s19  }
   0x9   : > { %p692_p5 = por %p102_p2, %p101_p0  ;;  %p696_p6 = por %p108_p4, %p107_p3 }
   0xa   : > { %p493_p7 = scmp.ge.s32.totalorder %s627_s15, 1  ;;  %p139_p8 = scmp.lt.s32.totalorder %s627_s15, 3 }
   0xc   : > { %p140_p9 = pnand %p493_p7, %p139_p8 }
   0xd   : > { %v169_v0 = vld [vmem:[%s862_s1 + $0x8] sm:$0xff] (!%p140_p9)  ;;  %v171_v1 = vld [vmem:[%s862_s1 + $0x18] sm:$0xff] (!%p140_p9)  ;;  %v168_v2 = vld [vmem:[%s862_s1] sm:$0xff] (!%p140_p9)  ;;  %v629_v7 = vmov (!%p140_p9), 0   ;;  %p162_p10 = scmp.lt.s32.totalorder (!%p140_p9), %s675_s16, 1  ;;  %v630_v51 = vmov (!%p140_p9), 0.0   ;;  %v219_v52 = vlaneseq (!%p140_p9) }
   0xe   : > { %143 = sbr.rel (%p140_p9) target bundleno = 1135 (0x46f), region = 32  ;;  %v202_v3 = vpack.c.bf16 (!%p140_p9), %v171_v1, %v169_v0  ;;  %v170_v4 = vld [vmem:[%s862_s1 + $0x10] sm:$0xff] (!%p140_p9)  ;;  %v173_v5 = vld [vmem:[%s862_s1 + $0x28] sm:$0xff] (!%p140_p9)  ;;  %v175_v6 = vld [vmem:[%s862_s1 + $0x38] sm:$0xff] (!%p140_p9)  ;;  %261 = vmatprep.mubr.bf16.mxu0 (!%p140_p9), %v629_v7  ;;  %507 = vmatprep.subr.mxu1 (!%p140_p9), %v630_v51  ;;  %vm631_vm0 = vmmov (!%p140_p9), 0   ;;  %vm273_vm1 = vcmask (!%p140_p9), 523264  }
   0xf   : > { %v201_v8 = vpack.c.bf16 (!%p140_p9), %v170_v4, %v168_v2  ;;  %v204_v9 = vpack.c.bf16 (!%p140_p9), %v175_v6, %v173_v5  ;;  %v172_v10 = vld [vmem:[%s862_s1 + $0x20] sm:$0xff] (!%p140_p9)  ;;  %v174_v11 = vld [vmem:[%s862_s1 + $0x30] sm:$0xff] (!%p140_p9)  ;;  %v177_v12 = vld [vmem:[%s862_s1 + $0x48] sm:$0xff] (!%p140_p9)  ;;  %509 = vmatprep.mubr.msk.f32.mxu1 (!%p140_p9), %vm631_vm0, %v630_v51  ;;  %v220_v53 = vshrl.u32 (!%p140_p9), %v219_v52, 7  ;;  %s632_s20 = smov (!%p140_p9), 64   ;;  %vm372_vm2 = vcmask (!%p140_p9), 1043456  }
  0x10   : > { %229 = vmatprep.subr.bf16.mxu0 (!%p140_p9), %v202_v3  ;;  %v179_v13 = vld [vmem:[%s862_s1 + $0x58] sm:$0xff] (!%p140_p9)  ;;  %v203_v14 = vpack.c.bf16 (!%p140_p9), %v174_v11, %v172_v10  ;;  %v176_v16 = vld [vmem:[%s862_s1 + $0x40] sm:$0xff] (!%p140_p9)  ;;  %v178_v17 = vld [vmem:[%s862_s1 + $0x50] sm:$0xff] (!%p140_p9)  ;;  %v352_v4 = vand.u32 (!%p140_p9), 127, %v219_v52  ;;  %vm355_vm4 = vcmask (!%p140_p9), 64512   ;;  %s159_s24 = sand.u32 (!%p140_p9), 1, %s619_s13  }
  0x11   : > { %230 = vmatpush1.bf16.msra.mxu0 (!%p140_p9), %v201_v8  ;;  %v206_v15 = vpack.c.bf16 (!%p140_p9), %v179_v13, %v177_v12  ;;  %v181_v18 = vld [vmem:[%s862_s1 + $0x68] sm:$0xff] (!%p140_p9)  ;;  %v183_v19 = vld [vmem:[%s862_s1 + $0x78] sm:$0xff] (!%p140_p9)  ;;  %v205_v20 = vpack.c.bf16 (!%p140_p9), %v178_v17, %v176_v16  ;;  %v180_v22 = vld [vmem:[%s862_s1 + $0x60] sm:$0xff] (!%p140_p9)  ;;  %v221_v54 = vsub.s32 (!%p140_p9), 0, %v220_v53  ;;  %v225_v62 = vsub.s32 (!%p140_p9), 1, %v220_v53  ;;  %s494_s25 = sshll.u32 (!%p140_p9), %s159_s24, 3 }
  0x12   : > { %231 = vmatprep.subr.bf16.mxu0 (!%p140_p9), %v204_v9  ;;  %v208_v21 = vpack.c.bf16 (!%p140_p9), %v183_v19, %v181_v18  ;;  %v182_v23 = vld [vmem:[%s862_s1 + $0x70] sm:$0xff] (!%p140_p9)  ;;  %v185_v24 = vld [vmem:[%s862_s1 + $0x88] sm:$0xff] (!%p140_p9)  ;;  %v187_v25 = vld [vmem:[%s862_s1 + $0x98] sm:$0xff] (!%p140_p9)  ;;  %vm353_vm3 = vcmp.le.s32.totalorder (!%p140_p9), %v352_v4, %v220_v53  ;;  %s500_s26 = sshll.u32 (!%p140_p9), %s675_s16, 7  ;;  %s161_s27 = scalar_lea.vmem (!%p140_p9), [#allocation2], %s494_s25 }
  0x13   : > { %v207_v26 = vpack.c.bf16 (!%p140_p9), %v182_v23, %v180_v22  ;;  %v210_v27 = vpack.c.bf16 (!%p140_p9), %v187_v25, %v185_v24  ;;  %v184_v28 = vld [vmem:[%s862_s1 + $0x80] sm:$0xff] (!%p140_p9)  ;;  %v186_v29 = vld [vmem:[%s862_s1 + $0x90] sm:$0xff] (!%p140_p9)  ;;  %v189_v30 = vld [vmem:[%s862_s1 + $0xa8] sm:$0xff] (!%p140_p9)  ;;  %s431_s28 = sshll.u32 (!%p140_p9), %s161_s27, 4  ;;  %s418_s5 = scalar_lea.sflag (!%p140_p9), [#allocation3], %s159_s24  ;;  %s820_s28 = int_to_ptr.vmem [resolvable:$true] %s431_s28 }
  0x14   : > { %v191_v31 = vld [vmem:[%s862_s1 + $0xb8] sm:$0xff] (!%p140_p9)  ;;  %v209_v32 = vpack.c.bf16 (!%p140_p9), %v186_v29, %v184_v28  ;;  %v188_v34 = vld [vmem:[%s862_s1 + $0xa0] sm:$0xff] (!%p140_p9)  ;;  %v190_v35 = vld [vmem:[%s862_s1 + $0xb0] sm:$0xff] (!%p140_p9)  ;;  %s565_s6 = scalar_lea.vmem (!%p140_p9), %s820_s28, 128 }
  0x15   : > { %232 = vmatpush1.bf16.msra.mxu0 %v203_v14  ;;  %v212_v33 = vpack.c.bf16 %v191_v31, %v189_v30  ;;  %v193_v36 = vld [vmem:[%s862_s1 + $0xc8] sm:$0xff]  ;;  %v195_v37 = vld [vmem:[%s862_s1 + $0xd8] sm:$0xff]  ;;  %s163_s19 = scalar_select %p162_p10, %s675_s16, 1  ;;  %v211_v38 = vpack.c.bf16 %v190_v35, %v188_v34  ;;  %v192_v40 = vld [vmem:[%s862_s1 + $0xc0] sm:$0xff] }
  0x16   : > { %233 = vmatprep.subr.bf16.mxu0 %v206_v15  ;;  %v214_v39 = vpack.c.bf16 %v195_v37, %v193_v36  ;;  %v194_v41 = vld [vmem:[%s862_s1 + $0xd0] sm:$0xff]  ;;  %v197_v42 = vld [vmem:[%s862_s1 + $0xe8] sm:$0xff]  ;;  %v199_v43 = vld [vmem:[%s862_s1 + $0xf8] sm:$0xff]  ;;  %p566_p11 = scmp.ne.s32.totalorder %s820_s28, %s565_s6  ;;  %s633_s16 = smov [#allocation2]  }
  0x17   : > { %s495_s4 = sshll.u32 %s163_s19, 3  ;;  %v213_v44 = vpack.c.bf16 %v194_v41, %v192_v40  ;;  %v216_v45 = vpack.c.bf16 %v199_v43, %v197_v42  ;;  %v196_v46 = vld [vmem:[%s862_s1 + $0xe0] sm:$0xff]  ;;  %v198_v47 = vld [vmem:[%s862_s1 + $0xf0] sm:$0xff]  ;;  %s569_s7 = sshll.u32 %s633_s16, 4  ;;  %s570_s7 = int_to_ptr.vmem [resolvable:$false] %s569_s7 }
  0x18   : > { %s165_s11 = scalar_lea.vmem %s861_s0, %s495_s4  ;;  %v215_v48 = vpack.c.bf16 %v198_v47, %v196_v46  ;;  %v217_v55 = vld [vmem:[%s863_s2] sm:$0x3]  ;;  %s818_s4 = scalar_lea.hbm %s864_s3, %s500_s26 }
  0x19   : > { %234 = vmatpush1.bf16.msra.mxu0 %v205_v20  ;;  %v167_v49 = vld [vmem:[%s165_s11] sm:$0xff]  ;;  %v222_v56 = vrot.slane %v217_v55, %v221_v54  ;;  %v226_v63 = vrot.slane %v217_v55, %v225_v62  ;;  %p567_p12 = pnand %p566_p11, %p692_p5  ;;  %s571_s8 = scalar_lea.vmem %s570_s7, 256 }
  0x1a   : > { %235 = vmatprep.subr.bf16.mxu0 %v208_v21  ;;  %v200_v50 = vpack.c.bf16 %v167_v49, %v167_v49  ;;  %p572_p0 = scmp.lt.s32.totalorder %s820_s28, %s570_s7  ;;  %p573_p1 = scmp.lt.s32.totalorder %s571_s8, %s565_s6 }
  0x1b   : > { %p568_p13 = pneg %p567_p12 }
  0x1c   : > { %p574_p2 = por %p573_p1, %p572_p0 }
  0x1d   : > { %236 = vmatpush1.bf16.msra.mxu0 %v207_v26 }
  0x1e   : > { %237 = vmatprep.subr.bf16.mxu0 %v210_v27  ;;  %p575_p3 = pnand %p574_p2, %p568_p13 }
  0x21   : > { %238 = vmatpush1.bf16.msra.mxu0 %v209_v32 }
  0x22   : > { %239 = vmatprep.subr.bf16.mxu0 %v212_v33 }
  0x25   : > { %240 = vmatpush1.bf16.msra.mxu0 %v211_v38 }
  0x26   : > { %241 = vmatprep.subr.bf16.mxu0 %v214_v39 }
  0x29   : > { %242 = vmatpush1.bf16.msra.mxu0 %v213_v44 }
  0x2a   : > { %243 = vmatprep.subr.bf16.mxu0 %v216_v45 }
  0x2d   : > { %244 = vmatpush1.bf16.msra.mxu0 %v215_v48 }
  0x30   : > { %262 = vmatmul.mubr.bf16.vlgmr.msra.gmra.mrb[0].mxu0 %v200_v50 }
 0x103   : > { %v263_v57 = vpop.f32.mrb[0].mxu0 }
 0x104   : > { %v264_v58 = vadd.f32 %v263_v57, %v222_v56  ;;  %v265_v59 = vpop.f32.mrb[1].mxu0 }
 0x105   : > { %v267_v60 = vpop.f32.mrb[2].mxu0  ;;  %v266_v0 = vadd.f32 %v265_v59, %v226_v63 }
 0x106   : > { %v268_v61 = vpop.f32.mrb[3].mxu0  ;;  %271 = vrot.lane.b32.xlu0 %v264_v58, %s632_s20  ;;  %508 = vmatpush3.xpose.msk.msra.mxu1 %vm273_vm1, %v264_v58 }
 0x107   : > { %512 = vmatprep.subr.bf16.mxu1 %v630_v51  ;;  %v368_v1 = vpack.c.bf16 %v266_v0, %v266_v0 }
 0x109   : > { %v374_v3 = vsel %vm372_vm2, %v368_v1, 0 }
 0x178   : > { %v272_v2 = vpop.permute.xlu0 %271 }
 0x179   : > { %510 = vmatmul.mubr.msk.f32.vlgmr.msra.gmra.mrb[0].mxu1 %vm273_vm1, %v272_v2 }
 0x17a   : > { %513 = vmatpush3.bf16.msra.mxu1 %v374_v3  ;;  %514 = vmatprep.mubr.msk.bf16.mxu1 %vm631_vm0, %v630_v51 }
 0x24c   : > { %v344_v5 = vpop.f32.mrb[0].mxu1 }
 0x24d   : > { %v348_v6 = vmul.f32 0.125, %v344_v5  ;;  %v511_v7 = vpop.f32.mrb[1].mxu1 }
 0x24f   : > { %v354_v8 = vsel %vm353_vm3, %v348_v6, -1e+12 }
 0x250   : > { %v356_v9 = vsel %vm355_vm4, %v354_v8, -inf }
 0x251   : > { %357 = vmax.xlane.f32.xlu0 %v356_v9 }
 0x2de   : > { %v358_v10 = vpop.xlane.xlu0 %357 }
 0x2df   : > { %v359_v11 = vsub.f32 %v354_v8, %v358_v10 }
 0x2e1   : > { %v360_v12 = vmul.f32 1.442695, %v359_v11 }
 0x2e3   : > { %561 = vpow2.f32 %v360_v12 }
 0x2ed   : > { %v562_v13 = vpop.eup %561 }
 0x2ee   : > { %v362_v14 = vsel %vm355_vm4, %v562_v13, 0.0 }
 0x2ef   : > { %363 = vadd.xlane.f32.xlu1 %v362_v14 }
 0x37c   : > { %v364_v15 = vpop.xlane.xlu1 %363 }
 0x37d   : > { %563 = vrcp.f32 %v364_v15 }
 0x387   : > { %v564_v16 = vpop.eup %563 }
 0x388   : > { %v366_v17 = vmul.f32 %v564_v16, %v562_v13 }
 0x38a   : > { %v367_v18 = vpack.c.bf16 %v366_v17, %v366_v17 }
 0x38c   : > { %515 = vmatmul.mubr.msk.bf16.vlgmr.msra.gmra.mrb[4].mxu1 %vm355_vm4, %v367_v18 }
 0x45f   : > { %v410_v19 = vpop.f32.mrb[4].mxu1 }
 0x460   : > { %416 = vst.msk [vmem:[%s161_s27] sm:$0xff] %vm273_vm1, %v410_v19  ;;  %v516_v20 = vpop.f32.mrb[5].mxu1 }
 0x461   : > { %v413_v21 = vpop.f32.mrb[6].mxu1 }
 0x462   : > { %578 = shalt.err (!%p575_p3)
}
 0x463   : > { %s579_s9 = scalar_lea.hbm %s818_s4, 128  ;;  %s583_s17 = scalar_lea.hbm %s864_s3, 256 }
 0x464   : > { %p580_p4 = scmp.ne.s32.totalorder %s818_s4, %s579_s9  ;;  %p584_p9 = scmp.lt.u32.totalorder %s818_s4, %s864_s3 }
 0x465   : > { %p585_p10 = scmp.lt.u32.totalorder %s583_s17, %s579_s9  ;;  %p587_p12 = scmp.lt.u32.totalorder %s579_s9, %s818_s4 }
 0x466   : > { %p581_p7 = pnand %p580_p4, %p692_p5 }
 0x467   : > { %p586_p11 = por %p585_p10, %p584_p9 }
 0x468   : > { %p582_p8 = pneg %p581_p7 }
 0x469   : > { %p588_p13 = por %p587_p12, %p586_p11 }
 0x46b   : > { %p589_p0 = pnand %p588_p13, %p582_p8 }
 0x46d   : > { %592 = shalt.err (!%p589_p0)
}
 0x46e   : > { %518 = dma.vmem_to_hbm [thread:$0]  (%p692_p5), %s820_s28, 128, %s818_s4, %s418_s5   ;;  %v517_v22 = vpop.f32.mrb[7].mxu1 }
 0x46f PF: > { %p524_p1 = scmp.ge.s32.totalorder %s627_s15, 2  ;;  %s443_s24 = sand.u32 1, %s615_s12  }
 0x470   : > { %s444_s25 = scalar_lea.sflag [#allocation3], %s443_s24 }
 0x471   : > { %p521_p2 = pnand %p524_p1, %p696_p6 }
 0x473   : > { %610 = dma.done.wait (!%p521_p2), %s444_s25, 128  }
 0x474   : > { %612 = vsyncadd (!%p521_p2), %s444_s25, 4294967168  ;;  %p13_p3 = scmp.ge.s32.totalorder %s679_s18, 4   ;;  %s867_s12 = smov %s619_s13 }
 0x475   : > { %s868_s13 = smov %s623_s14  ;;  %s869_s14 = smov %s690_s21 }
 0x476   : > { %s870_s15 = smov %s679_s18  ;;  %15 = sbr.rel (!%p13_p3) target bundleno = 3 (0x3), region = 67 }
 0x47d   :  { %449 = vsyncpa [#allocation3], 1 }
 0x47e   :  { %451 = vsyncpa [#allocation3 + $0x1], 1 }

</bundles_post_ra>
